<compile_context>
chip_gen: v6e
topology: v6e:2x2x1
jax: 0.10.0
libtpu: 0.0.40
codegen_flags: <defaults>
</compile_context>

<pallas_src>
import functools
import math

import jax
import jax.numpy as jnp
from jax.experimental import pallas as pl
from jax.experimental.pallas import tpu as pltpu


def _flash_attn_kernel(x_q_ref, x_kv_ref, wq_ref, wkv_ref, o_ref,
                       q_sc, m_sc, l_sc, acc_sc, k_cache, v_cache,
                       *, k_dim, kv_tile, compute_dtype):
    # Grid: (batch, head, q_tile, kv_tile); q_tile/kv_tile are "arbitrary" (sequential) axes.
    qt = pl.program_id(2)
    kv = pl.program_id(3)
    n_kv = pl.num_programs(3)

    kv_start = pl.multiple_of(kv * kv_tile, kv_tile)

    # Fill the per-(batch, head) K/V cache once, during the first q tile.  The fused
    # (Tk, D) x (D, Kd+Vd) projection keeps the matmul wide on the MXU; the column split into
    # the two caches happens only here (once per (b, h, kv)), never on the hot per-step path.
    @pl.when(qt == 0)
    def _():
        kvp = jnp.dot(x_kv_ref[0], wkv_ref[0], preferred_element_type=jnp.float32)
        k_cache[pl.ds(kv_start, kv_tile), :] = kvp[:, :k_dim].astype(k_cache.dtype)
        v_cache[pl.ds(kv_start, kv_tile), :] = kvp[:, k_dim:].astype(v_cache.dtype)

    # Per-(b, h, q_tile) init: project Q once and reset the online-softmax state.
    @pl.when(kv == 0)
    def _():
        q = jnp.dot(x_q_ref[0], wq_ref[0], preferred_element_type=jnp.float32)
        q_sc[...] = q.astype(q_sc.dtype)
        m_sc[...] = jnp.full_like(m_sc, -jnp.inf)
        l_sc[...] = jnp.zeros_like(l_sc)
        acc_sc[...] = jnp.zeros_like(acc_sc)

    kh = k_cache[pl.ds(kv_start, kv_tile), :]
    vh = v_cache[pl.ds(kv_start, kv_tile), :]

    # Scores: contract the head dim of Q and K directly (no materialized K transpose).
    # The 1/sqrt(k_dim) scale is folded into Wq on the host.
    s = jax.lax.dot_general(q_sc[...], kh,
                            dimension_numbers=(((1,), (1,)), ((), ())),
                            preferred_element_type=jnp.float32)          # (Tq, Tk)
    # TODO(synk): optional `mask` argument of the torch forward is not plumbed through
    # (mask=None path implemented).

    # Online softmax with f32 statistics (v5e has no bf16 VPU/EUP path).
    m_prev = m_sc[...]
    m_new = jnp.maximum(m_prev, jnp.max(s, axis=-1, keepdims=True))
    alpha = jnp.exp(m_prev - m_new)
    p = jnp.exp(s - m_new)
    l_sc[...] = alpha * l_sc[...] + jnp.sum(p, axis=-1, keepdims=True)
    acc_sc[...] = alpha * acc_sc[...] + jnp.dot(p.astype(compute_dtype), vh,
                                                preferred_element_type=jnp.float32)
    m_sc[...] = m_new

    # End of the KV loop: normalize once and write this head's attention output block.
    @pl.when(kv == n_kv - 1)
    def _():
        attn = acc_sc[...] * pl.reciprocal(l_sc[...], approx=True)
        o_ref[...] = attn.reshape(o_ref.shape).astype(o_ref.dtype)


def _out_proj_kernel(attn_ref, wo_ref, bo_ref, o_ref):
    # Fused output projection: single (Ts, H*Vd) x (H*Vd, D) matmul (full contraction depth).
    acc = jnp.dot(attn_ref[0], wo_ref[...], preferred_element_type=jnp.float32)
    o_ref[0] = (acc + bo_ref[...]).astype(o_ref.dtype)


def _vmem_limit_bytes(needed_bytes):
    """Generation-aware VMEM limit: ~75% of physical VMEM, 48 MiB conservative fallback."""
    cap = 48 * 1024 * 1024                      # safe even on v7x (64 MiB physical)
    try:
        info = pltpu.get_tpu_info()
        phys = getattr(info, "vmem_capacity_bytes", None)
        if phys:
            cap = int(0.75 * phys)              # ~48 MiB on v7x, ~96 MiB on v5e/v6e
    except Exception:
        pass
    return int(min(cap, max(32 * 1024 * 1024, int(1.3 * needed_bytes))))


def multi_head_attention(x, wq, wk, wv, wo, bo, *, num_heads, k_dim, v_dim,
                         compute_dtype=jnp.bfloat16, q_tile=128, kv_tile=256):
    B, S, D = x.shape
    H = num_heads
    assert wq.shape == (D, H * k_dim)
    assert wk.shape == (D, H * k_dim)
    assert wv.shape == (D, H * v_dim)
    assert wo.shape == (H * v_dim, D)
    assert bo.shape == (D,)

    tq = min(q_tile, S)
    tk = min(kv_tile, S)
    assert S % tq == 0 and S % tk == 0, "seq_len must be divisible by the q/kv tile sizes"
    n_q, n_kv = S // tq, S // tk

    it_c = jnp.dtype(compute_dtype).itemsize

    # Host-side weight prep: fold 1/sqrt(k_dim) into Wq, split per head, fuse Wk|Wv so K and V
    # come out of one MXU pass (width Kd+Vd).
    scale = 1.0 / math.sqrt(k_dim)
    wq_h = (wq * scale).reshape(D, H, k_dim).transpose(1, 0, 2).astype(compute_dtype)
    wk_h = wk.reshape(D, H, k_dim).transpose(1, 0, 2)
    wv_h = wv.reshape(D, H, v_dim).transpose(1, 0, 2)
    wkv_h = jnp.concatenate([wk_h, wv_h], axis=-1).astype(compute_dtype)   # (H, D, Kd+Vd)
    x_c = x.astype(compute_dtype)

    # Attention-pass output layout: direct (B, S, H*Vd) when the per-head column block is lane
    # aligned; otherwise head-major (B, H, S, Vd) + one host relayout.
    lane_aligned = (v_dim % 128 == 0)
    if lane_aligned:
        attn_shape = (B, S, H * v_dim)
        attn_spec = pl.BlockSpec((1, tq, v_dim), lambda b, h, qt, kv: (b, qt, h))
    else:
        attn_shape = (B, H, S, v_dim)
        attn_spec = pl.BlockSpec((1, 1, tq, v_dim), lambda b, h, qt, kv: (b, h, qt, 0))

    # Pin the x_kv window when qt > 0: the K/V projection only runs at qt == 0, so this avoids
    # re-streaming x's kv rows from HBM for every q tile.
    last_kv = n_kv - 1
    x_kv_map = lambda b, h, qt, kv: (b, jnp.where(qt == 0, kv, last_kv), 0)

    flash = functools.partial(_flash_attn_kernel, k_dim=k_dim, kv_tile=tk,
                              compute_dtype=compute_dtype)

    flops1 = (2 * B * H * S * D * k_dim                  # Q projections
              + 2 * B * H * S * D * (k_dim + v_dim)      # fused K/V projections (once per b,h)
              + 2 * B * H * S * S * (k_dim + v_dim))     # scores + P@V
    trans1 = B * H * S * S
    bytes1 = int((2 * B * H * S * D + B * H * D * (2 * k_dim + v_dim)
                  + B * S * H * v_dim) * it_c)

    needed1 = (2 * (tq * D + tk * D + D * k_dim + D * (k_dim + v_dim) + tq * v_dim) * it_c
               + (S * k_dim + S * v_dim + tq * k_dim) * it_c
               + (2 * tq + tq * v_dim) * 4)

    attn_out = pl.pallas_call(
        flash,
        out_shape=jax.ShapeDtypeStruct(attn_shape, compute_dtype),
        grid_spec=pltpu.PrefetchScalarGridSpec(
            num_scalar_prefetch=0,
            grid=(B, H, n_q, n_kv),
            in_specs=[
                pl.BlockSpec((1, tq, D), lambda b, h, qt, kv: (b, qt, 0)),            # x (q rows)
                pl.BlockSpec((1, tk, D), x_kv_map),                                   # x (kv rows)
                pl.BlockSpec((1, D, k_dim), lambda b, h, qt, kv: (h, 0, 0)),          # Wq (scaled)
                pl.BlockSpec((1, D, k_dim + v_dim), lambda b, h, qt, kv: (h, 0, 0)),  # Wk|Wv
            ],
            out_specs=attn_spec,
            scratch_shapes=[
                pltpu.VMEM((tq, k_dim), compute_dtype),   # projected Q for current (b,h,qt)
                pltpu.VMEM((tq, 1), jnp.float32),         # running row max
                pltpu.VMEM((tq, 1), jnp.float32),         # running denominator
                pltpu.VMEM((tq, v_dim), jnp.float32),     # P@V accumulator
                pltpu.VMEM((S, k_dim), compute_dtype),    # per-(b,h) projected K cache
                pltpu.VMEM((S, v_dim), compute_dtype),    # per-(b,h) projected V cache
            ],
        ),
        compiler_params=pltpu.CompilerParams(
            dimension_semantics=("parallel", "parallel", "arbitrary", "arbitrary"),
            vmem_limit_bytes=_vmem_limit_bytes(needed1),
        ),
        cost_estimate=pl.CostEstimate(flops=flops1, transcendentals=trans1,
                                      bytes_accessed=bytes1),
    )(x_c, x_c, wq_h, wkv_h)

    if not lane_aligned:
        # TODO(synk): when Vd % 128 == 0 (realistic head dims) the kernel writes the
        # (B, S, H*Vd) layout directly; this host relayout only exists for tiny head dims.
        attn_out = attn_out.transpose(0, 2, 1, 3).reshape(B, S, H * v_dim)

    # Output projection kernel: full-Wo matmul + bias.
    HV = H * v_dim
    ts = min(256, S)
    assert S % ts == 0
    tn = 512 if (D > 512 and D % 512 == 0) else D
    n_s, n_n = S // ts, D // tn

    wo_c = wo.astype(compute_dtype)
    bo2 = bo.reshape(1, D).astype(jnp.float32)

    flops2 = 2 * B * S * HV * D
    bytes2 = int(B * S * HV * it_c + HV * D * it_c
                 + B * S * D * jnp.dtype(x.dtype).itemsize)
    needed2 = 2 * (ts * HV + HV * tn + tn) * it_c + 2 * ts * tn * 4 + 2 * tn * 4

    out = pl.pallas_call(
        _out_proj_kernel,
        out_shape=jax.ShapeDtypeStruct((B, S, D), x.dtype),
        grid_spec=pltpu.PrefetchScalarGridSpec(
            num_scalar_prefetch=0,
            grid=(B, n_s, n_n),
            in_specs=[
                pl.BlockSpec((1, ts, HV), lambda b, st, nt: (b, st, 0)),
                pl.BlockSpec((HV, tn), lambda b, st, nt: (0, nt)),
                pl.BlockSpec((1, tn), lambda b, st, nt: (0, nt)),
            ],
            out_specs=pl.BlockSpec((1, ts, tn), lambda b, st, nt: (b, st, nt)),
        ),
        compiler_params=pltpu.CompilerParams(
            dimension_semantics=("parallel", "parallel", "parallel"),
            vmem_limit_bytes=_vmem_limit_bytes(needed2),
        ),
        cost_estimate=pl.CostEstimate(flops=flops2, transcendentals=0,
                                      bytes_accessed=bytes2),
    )(attn_out, wo_c, bo2)

    return out


def reference_mha(x, wq, wk, wv, wo, bo, *, num_heads, k_dim, v_dim):
    """Pure-JAX (f32) reference mirroring the PyTorch forward."""
    B, S, D = x.shape
    q = (x @ wq).reshape(B, S, num_heads, k_dim).transpose(0, 2, 1, 3)   # (B,H,S,Kd)
    k = (x @ wk).reshape(B, S, num_heads, k_dim).transpose(0, 2, 3, 1)   # (B,H,Kd,S)
    v = (x @ wv).reshape(B, S, num_heads, v_dim).transpose(0, 2, 1, 3)   # (B,H,S,Vd)
    attn = jnp.matmul(q, k) / (k_dim ** 0.5)
    attn = jax.nn.softmax(attn, axis=-1)
    out = jnp.matmul(attn, v).transpose(0, 2, 1, 3).reshape(B, S, num_heads * v_dim)
    return out @ wo + bo


def _run_config(key, *, B, S, D, num_heads, k_dim, v_dim, q_tile, kv_tile, tol):
    kx, kq, kk, kvk, ko, kb = jax.random.split(key, 6)
    x = jax.random.normal(kx, (B, S, D), dtype=jnp.float32)
    sw = 1.0 / math.sqrt(D)
    so = 1.0 / math.sqrt(num_heads * v_dim)
    wq = jax.random.normal(kq, (D, num_heads * k_dim), dtype=jnp.float32) * sw
    wk = jax.random.normal(kk, (D, num_heads * k_dim), dtype=jnp.float32) * sw
    wv = jax.random.normal(kvk, (D, num_heads * v_dim), dtype=jnp.float32) * sw
    wo = jax.random.normal(ko, (num_heads * v_dim, D), dtype=jnp.float32) * so
    bo = jax.random.normal(kb, (D,), dtype=jnp.float32) * 0.1

    out = multi_head_attention(x, wq, wk, wv, wo, bo,
                               num_heads=num_heads, k_dim=k_dim, v_dim=v_dim,
                               q_tile=q_tile, kv_tile=kv_tile)
    out = jax.block_until_ready(out)

    ref = reference_mha(x, wq, wk, wv, wo, bo,
                        num_heads=num_heads, k_dim=k_dim, v_dim=v_dim)
    assert out.shape == (B, S, D)
    max_err = float(jnp.max(jnp.abs(out - ref)))
    # bf16 MXU operands + approx reciprocal -> looser tolerance than pure-f32.
    assert jnp.allclose(out, ref, atol=tol, rtol=tol), (
        f"Pallas kernel mismatch vs reference (max_abs_err={max_err})")


if __name__ == "__main__":
    key = jax.random.PRNGKey(0)
    k1, k2 = jax.random.split(key)

    # Small config matching the module spec (tiny head dims -> head-major layout path).
    _run_config(k1, B=2, S=8, D=32, num_heads=2, k_dim=16, v_dim=16,
                q_tile=128, kv_tile=256, tol=5e-2)

    # Lane-aligned config (Kd=Vd=128) exercising the multi-tile flash loop, the per-(b,h)
    # K/V cache reuse across q tiles, and the direct (B, S, H*Vd) output layout.
    _run_config(k2, B=1, S=512, D=256, num_heads=2, k_dim=128, v_dim=128,
                q_tile=128, kv_tile=256, tol=5e-2)

    print("KERNEL_OK")
</pallas_src>

<mosaic_0001>
module attributes {stable_mosaic.version = 11 : i64} {
  func.func @_flash_attn_kernel(%arg0: i32, %arg1: i32, %arg2: i32, %arg3: i32, %arg4: memref<1x8x32xbf16, #tpu.memory_space<vmem>>, %arg5: memref<1x8x32xbf16, #tpu.memory_space<vmem>>, %arg6: memref<1x32x16xbf16, #tpu.memory_space<vmem>>, %arg7: memref<1x32x32xbf16, #tpu.memory_space<vmem>>, %arg8: memref<1x1x8x16xbf16, #tpu.memory_space<vmem>>, %arg9: memref<8x16xbf16, #tpu.memory_space<vmem>>, %arg10: memref<8x1xf32, #tpu.memory_space<vmem>>, %arg11: memref<8x1xf32, #tpu.memory_space<vmem>>, %arg12: memref<8x16xf32, #tpu.memory_space<vmem>>, %arg13: memref<8x16xbf16, #tpu.memory_space<vmem>>, %arg14: memref<8x16xbf16, #tpu.memory_space<vmem>>) attributes {dimension_semantics = [#tpu.dimension_semantics<parallel>, #tpu.dimension_semantics<parallel>, #tpu.dimension_semantics<arbitrary>, #tpu.dimension_semantics<arbitrary>], iteration_bounds = array<i64: 2, 2, 1, 1>, scalar_prefetch = 0 : i64, scratch_operands = 6 : i64, tpu.core_type = #tpu.core_type<tc>, window_params = [{transform_indices = @transform_0, window_bounds = array<i64: 1, 8, 32>}, {transform_indices = @transform_1, window_bounds = array<i64: 1, 8, 32>}, {transform_indices = @transform_2, window_bounds = array<i64: 1, 32, 16>}, {transform_indices = @transform_3, window_bounds = array<i64: 1, 32, 32>}, {transform_indices = @transform_4, window_bounds = array<i64: 1, 1, 8, 16>}]} {
    %c8_i32 = arith.constant 8 : i32
    %0 = arith.muli %arg3, %c8_i32 : i32
    %1 = tpu.assume_multiple %0, 8 : i32
    %c0_i32 = arith.constant 0 : i32
    %2 = arith.cmpi eq, %arg2, %c0_i32 : i32
    %3 = arith.extui %2 : i1 to i32
    %c0_i32_0 = arith.constant 0 : i32
    %4 = arith.cmpi ne, %3, %c0_i32_0 : i32
    scf.if %4 {
      %c0_23 = arith.constant 0 : index
      %c0_24 = arith.constant 0 : index
      %c0_25 = arith.constant 0 : index
      %40 = vector.load %arg5[%c0_23, %c0_24, %c0_25] : memref<1x8x32xbf16, #tpu.memory_space<vmem>>, vector<1x8x32xbf16>
      %41 = vector.shape_cast %40 : vector<1x8x32xbf16> to vector<8x32xbf16>
      %c0_26 = arith.constant 0 : index
      %c0_27 = arith.constant 0 : index
      %c0_28 = arith.constant 0 : index
      %42 = vector.load %arg7[%c0_26, %c0_27, %c0_28] : memref<1x32x32xbf16, #tpu.memory_space<vmem>>, vector<1x32x32xbf16>
      %43 = vector.shape_cast %42 : vector<1x32x32xbf16> to vector<32x32xbf16>
      %cst_29 = arith.constant dense<0.000000e+00> : vector<8x32xf32>
      %44 = tpu.matmul %41, %43, %cst_29 {dimension_numbers = #tpu.dot_dimension_numbers<[1], [0], [0], [1], [0, 0, 1, 1], [], []>} : vector<8x32xbf16>, vector<32x32xbf16>, vector<8x32xf32> -> vector<8x32xf32>
      %45 = vector.extract_strided_slice %44 {offsets = [0, 0], sizes = [8, 16], strides = [1, 1]} : vector<8x32xf32> to vector<8x16xf32>
      %46 = arith.truncf %45 : vector<8x16xf32> to vector<8x16xbf16>
      %47 = arith.index_cast %1 : i32 to index
      %c0_30 = arith.constant 0 : index
      %48 = vector.load %arg13[%47, %c0_30] : memref<8x16xbf16, #tpu.memory_space<vmem>>, vector<8x16xbf16>
      tpu.vector_store %arg13[%47, %c0_30], %46 {strides = array<i32>} : memref<8x16xbf16, #tpu.memory_space<vmem>>, vector<8x16xbf16>,
      %49 = vector.extract_strided_slice %44 {offsets = [0, 16], sizes = [8, 16], strides = [1, 1]} : vector<8x32xf32> to vector<8x16xf32>
      %50 = arith.truncf %49 : vector<8x16xf32> to vector<8x16xbf16>
      %51 = arith.index_cast %1 : i32 to index
      %c0_31 = arith.constant 0 : index
      %52 = vector.load %arg14[%51, %c0_31] : memref<8x16xbf16, #tpu.memory_space<vmem>>, vector<8x16xbf16>
      tpu.vector_store %arg14[%51, %c0_31], %50 {strides = array<i32>} : memref<8x16xbf16, #tpu.memory_space<vmem>>, vector<8x16xbf16>,
    } else {
    }
    %c0_i32_1 = arith.constant 0 : i32
    %5 = arith.cmpi eq, %arg3, %c0_i32_1 : i32
    %6 = arith.extui %5 : i1 to i32
    %c0_i32_2 = arith.constant 0 : i32
    %7 = arith.cmpi ne, %6, %c0_i32_2 : i32
    scf.if %7 {
      %c0_23 = arith.constant 0 : index
      %c0_24 = arith.constant 0 : index
      %c0_25 = arith.constant 0 : index
      %40 = vector.load %arg4[%c0_23, %c0_24, %c0_25] : memref<1x8x32xbf16, #tpu.memory_space<vmem>>, vector<1x8x32xbf16>
      %41 = vector.shape_cast %40 : vector<1x8x32xbf16> to vector<8x32xbf16>
      %c0_26 = arith.constant 0 : index
      %c0_27 = arith.constant 0 : index
      %c0_28 = arith.constant 0 : index
      %42 = vector.load %arg6[%c0_26, %c0_27, %c0_28] : memref<1x32x16xbf16, #tpu.memory_space<vmem>>, vector<1x32x16xbf16>
      %43 = vector.shape_cast %42 : vector<1x32x16xbf16> to vector<32x16xbf16>
      %cst_29 = arith.constant dense<0.000000e+00> : vector<8x16xf32>
      %44 = tpu.matmul %41, %43, %cst_29 {dimension_numbers = #tpu.dot_dimension_numbers<[1], [0], [0], [1], [0, 0, 1, 1], [], []>} : vector<8x32xbf16>, vector<32x16xbf16>, vector<8x16xf32> -> vector<8x16xf32>
      %45 = arith.truncf %44 : vector<8x16xf32> to vector<8x16xbf16>
      %c0_30 = arith.constant 0 : index
      %c0_31 = arith.constant 0 : index
      %46 = vector.load %arg9[%c0_30, %c0_31] : memref<8x16xbf16, #tpu.memory_space<vmem>>, vector<8x16xbf16>
      tpu.vector_store %arg9[%c0_30, %c0_31], %45 {strides = array<i32>} : memref<8x16xbf16, #tpu.memory_space<vmem>>, vector<8x16xbf16>,
      %cst_32 = arith.constant 0xFF800000 : f32
      %47 = vector.broadcast %cst_32 : f32 to vector<8x1xf32>
      %c0_33 = arith.constant 0 : index
      %c0_34 = arith.constant 0 : index
      %48 = vector.load %arg10[%c0_33, %c0_34] : memref<8x1xf32, #tpu.memory_space<vmem>>, vector<8x1xf32>
      tpu.vector_store %arg10[%c0_33, %c0_34], %47 {strides = array<i32>} : memref<8x1xf32, #tpu.memory_space<vmem>>, vector<8x1xf32>,
      %cst_35 = arith.constant 0.000000e+00 : f32
      %49 = vector.broadcast %cst_35 : f32 to vector<8x1xf32>
      %c0_36 = arith.constant 0 : index
      %c0_37 = arith.constant 0 : index
      %50 = vector.load %arg11[%c0_36, %c0_37] : memref<8x1xf32, #tpu.memory_space<vmem>>, vector<8x1xf32>
      tpu.vector_store %arg11[%c0_36, %c0_37], %49 {strides = array<i32>} : memref<8x1xf32, #tpu.memory_space<vmem>>, vector<8x1xf32>,
      %cst_38 = arith.constant 0.000000e+00 : f32
      %51 = vector.broadcast %cst_38 : f32 to vector<8x16xf32>
      %c0_39 = arith.constant 0 : index
      %c0_40 = arith.constant 0 : index
      %52 = vector.load %arg12[%c0_39, %c0_40] : memref<8x16xf32, #tpu.memory_space<vmem>>, vector<8x16xf32>
      tpu.vector_store %arg12[%c0_39, %c0_40], %51 {strides = array<i32>} : memref<8x16xf32, #tpu.memory_space<vmem>>, vector<8x16xf32>,
    } else {
    }
    %8 = arith.index_cast %1 : i32 to index
    %c0 = arith.constant 0 : index
    %9 = vector.load %arg13[%8, %c0] : memref<8x16xbf16, #tpu.memory_space<vmem>>, vector<8x16xbf16>
    %10 = arith.index_cast %1 : i32 to index
    %c0_3 = arith.constant 0 : index
    %11 = vector.load %arg14[%10, %c0_3] : memref<8x16xbf16, #tpu.memory_space<vmem>>, vector<8x16xbf16>
    %c0_4 = arith.constant 0 : index
    %c0_5 = arith.constant 0 : index
    %12 = vector.load %arg9[%c0_4, %c0_5] : memref<8x16xbf16, #tpu.memory_space<vmem>>, vector<8x16xbf16>
    %cst = arith.constant dense<0.000000e+00> : vector<8x8xf32>
    %13 = tpu.matmul %12, %9, %cst {dimension_numbers = #tpu.dot_dimension_numbers<[1], [1], [0], [0], [0, 0, 1, 0], [], []>} : vector<8x16xbf16>, vector<8x16xbf16>, vector<8x8xf32> -> vector<8x8xf32>
    %c0_6 = arith.constant 0 : index
    %c0_7 = arith.constant 0 : index
    %14 = vector.load %arg10[%c0_6, %c0_7] : memref<8x1xf32, #tpu.memory_space<vmem>>, vector<8x1xf32>
    %cst_8 = arith.constant dense<0xFF800000> : vector<8xf32>
    %15 = vector.multi_reduction <maximumf>, %13, %cst_8 [1] : vector<8x8xf32> to vector<8xf32>
    %16 = vector.shape_cast %15 : vector<8xf32> to vector<8x1xf32>
    %17 = arith.maximumf %14, %16 : vector<8x1xf32>
    %18 = arith.subf %14, %17 : vector<8x1xf32>
    %19 = math.exp %18 : vector<8x1xf32>
    %20 = vector.broadcast %17 : vector<8x1xf32> to vector<8x8xf32>
    %21 = arith.subf %13, %20 : vector<8x8xf32>
    %22 = math.exp %21 : vector<8x8xf32>
    %c0_9 = arith.constant 0 : index
    %c0_10 = arith.constant 0 : index
    %23 = vector.load %arg11[%c0_9, %c0_10] : memref<8x1xf32, #tpu.memory_space<vmem>>, vector<8x1xf32>
    %24 = arith.mulf %19, %23 : vector<8x1xf32>
    %cst_11 = arith.constant dense<0.000000e+00> : vector<8xf32>
    %25 = vector.multi_reduction <add>, %22, %cst_11 [1] : vector<8x8xf32> to vector<8xf32>
    %26 = vector.shape_cast %25 : vector<8xf32> to vector<8x1xf32>
    %27 = arith.addf %24, %26 : vector<8x1xf32>
    %c0_12 = arith.constant 0 : index
    %c0_13 = arith.constant 0 : index
    %28 = vector.load %arg11[%c0_12, %c0_13] : memref<8x1xf32, #tpu.memory_space<vmem>>, vector<8x1xf32>
    tpu.vector_store %arg11[%c0_12, %c0_13], %27 {strides = array<i32>} : memref<8x1xf32, #tpu.memory_space<vmem>>, vector<8x1xf32>,
    %c0_14 = arith.constant 0 : index
    %c0_15 = arith.constant 0 : index
    %29 = vector.load %arg12[%c0_14, %c0_15] : memref<8x16xf32, #tpu.memory_space<vmem>>, vector<8x16xf32>
    %30 = vector.broadcast %19 : vector<8x1xf32> to vector<8x16xf32>
    %31 = arith.mulf %30, %29 : vector<8x16xf32>
    %32 = arith.truncf %22 : vector<8x8xf32> to vector<8x8xbf16>
    %cst_16 = arith.constant dense<0.000000e+00> : vector<8x16xf32>
    %33 = tpu.matmul %32, %11, %cst_16 {dimension_numbers = #tpu.dot_dimension_numbers<[1], [0], [0], [1], [0, 0, 1, 1], [], []>} : vector<8x8xbf16>, vector<8x16xbf16>, vector<8x16xf32> -> vector<8x16xf32>
    %34 = arith.addf %31, %33 : vector<8x16xf32>
    %c0_17 = arith.constant 0 : index
    %c0_18 = arith.constant 0 : index
    %35 = vector.load %arg12[%c0_17, %c0_18] : memref<8x16xf32, #tpu.memory_space<vmem>>, vector<8x16xf32>
    tpu.vector_store %arg12[%c0_17, %c0_18], %34 {strides = array<i32>} : memref<8x16xf32, #tpu.memory_space<vmem>>, vector<8x16xf32>,
    %c0_19 = arith.constant 0 : index
    %c0_20 = arith.constant 0 : index
    %36 = vector.load %arg10[%c0_19, %c0_20] : memref<8x1xf32, #tpu.memory_space<vmem>>, vector<8x1xf32>
    tpu.vector_store %arg10[%c0_19, %c0_20], %17 {strides = array<i32>} : memref<8x1xf32, #tpu.memory_space<vmem>>, vector<8x1xf32>,
    %c0_i32_21 = arith.constant 0 : i32
    %37 = arith.cmpi eq, %arg3, %c0_i32_21 : i32
    %38 = arith.extui %37 : i1 to i32
    %c0_i32_22 = arith.constant 0 : i32
    %39 = arith.cmpi ne, %38, %c0_i32_22 : i32
    scf.if %39 {
      %c0_23 = arith.constant 0 : index
      %c0_24 = arith.constant 0 : index
      %40 = vector.load %arg12[%c0_23, %c0_24] : memref<8x16xf32, #tpu.memory_space<vmem>>, vector<8x16xf32>
      %c0_25 = arith.constant 0 : index
      %c0_26 = arith.constant 0 : index
      %41 = vector.load %arg11[%c0_25, %c0_26] : memref<8x1xf32, #tpu.memory_space<vmem>>, vector<8x1xf32>
      %42 = tpu.reciprocal %41 {approx = true} : vector<8x1xf32> -> vector<8x1xf32>
      %43 = vector.broadcast %42 : vector<8x1xf32> to vector<8x16xf32>
      %44 = arith.mulf %40, %43 : vector<8x16xf32>
      %45 = vector.shape_cast %44 : vector<8x16xf32> to vector<1x1x8x16xf32>
      %46 = arith.truncf %45 : vector<1x1x8x16xf32> to vector<1x1x8x16xbf16>
      %c0_27 = arith.constant 0 : index
      %c0_28 = arith.constant 0 : index
      %c0_29 = arith.constant 0 : index
      %c0_30 = arith.constant 0 : index
      %47 = vector.load %arg8[%c0_27, %c0_28, %c0_29, %c0_30] : memref<1x1x8x16xbf16, #tpu.memory_space<vmem>>, vector<1x1x8x16xbf16>
      tpu.vector_store %arg8[%c0_27, %c0_28, %c0_29, %c0_30], %46 {strides = array<i32>} : memref<1x1x8x16xbf16, #tpu.memory_space<vmem>>, vector<1x1x8x16xbf16>,
    } else {
    }
    return
  }
  func.func @transform_0(%arg0: i32, %arg1: i32, %arg2: i32, %arg3: i32) -> (i32, i32, i32) {
    %c0_i32 = arith.constant 0 : i32
    %c0_i32_0 = arith.constant 0 : i32
    return %arg0, %arg2, %c0_i32 : i32, i32, i32
  }
  func.func @transform_1(%arg0: i32, %arg1: i32, %arg2: i32, %arg3: i32) -> (i32, i32, i32) {
    %c0_i32 = arith.constant 0 : i32
    %0 = arith.cmpi eq, %arg2, %c0_i32 : i32
    %c0_i32_0 = arith.constant 0 : i32
    %1 = arith.select %0, %arg3, %c0_i32_0 : i32
    %c0_i32_1 = arith.constant 0 : i32
    %c0_i32_2 = arith.constant 0 : i32
    return %arg0, %1, %c0_i32_1 : i32, i32, i32
  }
  func.func @transform_2(%arg0: i32, %arg1: i32, %arg2: i32, %arg3: i32) -> (i32, i32, i32) {
    %c0_i32 = arith.constant 0 : i32
    %c0_i32_0 = arith.constant 0 : i32
    %c0_i32_1 = arith.constant 0 : i32
    return %arg1, %c0_i32, %c0_i32_0 : i32, i32, i32
  }
  func.func @transform_3(%arg0: i32, %arg1: i32, %arg2: i32, %arg3: i32) -> (i32, i32, i32) {
    %c0_i32 = arith.constant 0 : i32
    %c0_i32_0 = arith.constant 0 : i32
    %c0_i32_1 = arith.constant 0 : i32
    return %arg1, %c0_i32, %c0_i32_0 : i32, i32, i32
  }
  func.func @transform_4(%arg0: i32, %arg1: i32, %arg2: i32, %arg3: i32) -> (i32, i32, i32, i32) {
    %c0_i32 = arith.constant 0 : i32
    %c0_i32_0 = arith.constant 0 : i32
    return %arg0, %arg1, %arg2, %c0_i32 : i32, i32, i32, i32
  }
}

</mosaic_0001>

<bundles_post_ra>
// kernel: tpu_custom_call.1
= control target key start
LH: loop header
LB: loop body
LE: loop exit
PB: predicated region body
PF: predicated region fallthrough
CT: control target
= control target key end

     0   :  { %9 = vsyncpa [#allocation9], 0  ;;  %s1204_s0 = inlined_call_operand.vmem [shape: bf16[2,8,32], index: 0, kind: input, shape index: {}]   ;;  %s1205_s1 = inlined_call_operand.vmem [shape: bf16[2,8,32], index: 1, kind: input, shape index: {}]   ;;  %s1206_s2 = inlined_call_operand.vmem [shape: bf16[2,32,16], index: 2, kind: input, shape index: {}]   ;;  %s1207_s3 = inlined_call_operand.vmem [shape: bf16[2,32,32], index: 3, kind: input, shape index: {}]   ;;  %s1208_s4 = inlined_call_operand.hbm [shape: bf16[2,2,8,16], index: 4, kind: output, shape index: {}]  }
   0x1   :  { %11 = vsyncpa [#allocation9 + $0x1], 0  ;;  %s1052_s15 = smov 0   ;;  %s1054_s16 = smov 0  }
   0x2   :  { %s1056_s17 = smov 0   ;;  %s1058_s18 = smov 0  }
   0x3   :  { %s1060_s19 = smov 0   ;;  %s1062_s20 = smov 0  }
   0x4   :  { %s1064_s21 = smov 0   ;;  %s1066_s22 = smov 0  }
   0x5 LB: > { %s772_s23 = sadd.s32 4294967295, %s1019_s22   ;;  %s773_s24 = sadd.s32 4294967294, %s1019_s22   ;;  %s1019_s22 = sphi %s1066_s22, %s17_s22   ;;  %s1015_s21 = sphi %s1064_s21, %s1217_s21   ;;  %s1011_s20 = sphi %s1062_s20, %s1216_s20   ;;  %s1007_s19 = sphi %s1060_s19, %s1215_s19   ;;  %s1003_s18 = sphi %s1058_s18, %s1214_s18   ;;  %s999_s17 = sphi %s1056_s17, %s1213_s17   ;;  %s995_s16 = sphi %s1054_s16, %s1212_s16   ;;  %s991_s15 = sphi %s1052_s15, %s1211_s15  }
   0x6   : > { %s39_s25 = sadd.s32 1, %s1011_s20  ;;  %s43_s26 = sadd.s32 1, %s1015_s21 }
   0x7   : > { %p41_p0 = scmp.ge.s32.totalorder %s39_s25, 2  ;;  %p176_p1 = scmp.ne.s32.totalorder %s999_s17, %s995_s16 }
   0x8   : > { %p177_p2 = scmp.eq.s32.totalorder %s772_s23, 3  ;;  %p182_p5 = scmp.ne.s32.totalorder %s995_s16, %s991_s15 }
   0x9   : > { %s1219_s25 = smov (%p41_p0, %s39_s25), 0  ;;  %s1221_s26 = smov (!%p41_p0, %s43_s26), %s1015_s21 }
   0xa   : > { %s160_s27 = ssub.s32 %s1011_s20, %s1219_s25  ;;  %p1103_p3 = por %p177_p2, %p176_p1 }
   0xb   : > { %p45_p4 = scmp.ge.s32.totalorder %s1221_s26, 2  ;;  %p183_p6 = scmp.eq.s32.totalorder %s773_s24, 3 }
   0xc   : > { %p776_p7 = scmp.ge.s32.totalorder %s1019_s22, 1  ;;  %p241_p9 = scmp.lt.s32.totalorder %s1019_s22, 5 }
   0xd   : > { %s1223_s26 = smov (%p45_p4, %s1221_s26), 0  ;;  %p1112_p8 = por %p183_p6, %p182_p5 }
   0xe   : > { %s159_s30 = ssub.s32 %s1015_s21, %s1223_s26  ;;  %s166_s5 = sadd.s32 1, %s999_s17 }
   0xf   : > { %s161_s6 = sor.u32 %s160_s27, %s159_s30  ;;  %p242_p10 = pnand %p776_p7, %p241_p9 }
  0x10   : > { %p164_p11 = scmp.eq.s32.totalorder %s161_s6, 0  ;;  %p306_p12 = scmp.lt.s32.totalorder (!%p242_p10), %s1003_s18, 1 }
  0x11   : > { %245 = sbr.rel (%p242_p10) target bundleno = 1025 (0x401), region = 36  ;;  %p288_p13 = scmp.lt.s32.totalorder (!%p242_p10), %s1007_s19, 1 }
  0x12   : > { %s1121_s7 = scalar_select %p164_p11, %s999_s17, %s166_s5  }
  0x13   : > { %s794_s14 = sshll.u32 (!%p242_p10), %s1007_s19, 1 }
  0x14   : > { %s639_s23 = sadd.s32 (!%p242_p10), %s1003_s18, %s794_s14 }
  0x16   : > { %v1021_v0 = vmov 0.0   ;;  %s307_s8 = scalar_select %p306_p12, %s1003_s18, 1  ;;  %vm1022_vm0 = vmmov 0   ;;  %vm339_vm1 = vcmask 261120   ;;  %vm470_vm2 = vcmask 130048  }
  0x17   : > { %811 = vmatprep.subr.bf16.mxu0 %v1021_v0  ;;  %819 = vmatprep.subr.bf16.mxu1 %v1021_v0  ;;  %s289_s9 = scalar_select %p288_p13, %s1007_s19, 1  ;;  %471 = vst.msk [vmem:[#allocation5] sm:$0xff] %vm470_vm2, %v1021_v0  ;;  %vm388_vm3 = vcmask 125952   ;;  %vm467_vm4 = vcmask 7168   ;;  %v1024_v20 = vmov -inf   ;;  %vm564_vm5 = vcmask 1043456  }
  0x18   : > { %815 = vmatprep.mubr.msk.bf16.mxu0 %vm1022_vm0, %v1021_v0  ;;  %823 = vmatprep.mubr.msk.bf16.mxu1 %vm1022_vm0, %v1021_v0  ;;  %s798_s10 = sshll.u32 %s307_s8, 4  ;;  %468 = vst.msk [vmem:[#allocation3] sm:$0xff] %vm467_vm4, %v1024_v20  ;;  %469 = vst.msk [vmem:[#allocation4] sm:$0xff] %vm467_vm4, %v1021_v0  ;;  %vm529_vm6 = vcmask 64512   ;;  %v1025_v29 = vmov 0   ;;  %s1026_s18 = smov [#allocation8]  }
  0x19   : > { %s315_s13 = scalar_lea.vmem %s1207_s3, %s798_s10  ;;  %s310_s24 = scalar_lea.vmem %s1206_s2, %s798_s10  ;;  %915 = vset.pattern.permute.xlu0 %v1025_v29  ;;  %916 = vset.pattern.permute.xlu1 %v1025_v29 }
  0x1a   : > { %v917_v1 = vld [vmem:[%s315_s13 + $0x8] sm:$0xff]   ;;  %s778_s27 = sshll.u32 %s289_s9, 2  ;;  %v919_v3 = vld [vmem:[%s315_s13] sm:$0xff]   ;;  %s1023_s9 = smov 112  }
  0x1b   : > { %v918_v2 = vld [vmem:[%s310_s24 + $0x8] sm:$0xff]   ;;  %812 = vmatpush3.bf16.msra.mxu0 %v917_v1  ;;  %s303_s6 = scalar_lea.vmem %s1205_s1, %s778_s27  ;;  %v920_v4 = vld [vmem:[%s310_s24] sm:$0xff]   ;;  %s294_s12 = scalar_lea.vmem %s1204_s0, %s778_s27 }
  0x1c   : > { %813 = vmatprep.subr.bf16.mxu0 %v1021_v0  ;;  %820 = vmatpush3.bf16.msra.mxu1 %v918_v2  ;;  %v322_v5 = vld [vmem:[%s303_s6] sm:$0xf]  ;;  %s285_s10 = sand.u32 1, %s995_s16   ;;  %s795_s24 = sshll.u32 %s639_s23, 6 }
  0x1d   : > { %821 = vmatprep.subr.bf16.mxu1 %v1021_v0  ;;  %v403_v6 = vld [vmem:[%s294_s12] sm:$0xf]  ;;  %s777_s13 = sshll.u32 %s285_s10, 2  ;;  %s641_s8 = scalar_lea.hbm %s1208_s4, %s795_s24 }
  0x1e   : > { %v553_v48 = vld [vmem:[#allocation5] sm:$0xff]  ;;  %s287_s27 = scalar_lea.vmem [#allocation8], %s777_s13  ;;  %s627_s11 = scalar_lea.sflag [#allocation9], %s285_s10 }
  0x1f   : > { %814 = vmatpush3.bf16.msra.mxu0 %v919_v3  ;;  %v528_v30 = vld [vmem:[#allocation3] sm:$0xff]  ;;  %v545_v42 = vld [vmem:[#allocation4] sm:$0xff]  ;;  %s643_s30 = sshll.u32 %s287_s27, 4  ;;  %s931_s19 = sshll.u32 %s1026_s18, 4  ;;  %s644_s30 = int_to_ptr.vmem [resolvable:$true] %s643_s30  ;;  %s932_s19 = int_to_ptr.vmem [resolvable:$false] %s931_s19 }
  0x20   : > { %822 = vmatpush3.bf16.msra.mxu1 %v920_v4  ;;  %827 = vmatprep.subr.bf16.mxu0 %v1021_v0  ;;  %s927_s12 = scalar_lea.vmem %s644_s30, 64  ;;  %p934_p4 = scmp.lt.s32.totalorder %s644_s30, %s932_s19 }
  0x21   : > { %833 = vmatprep.subr.bf16.mxu1 %v1021_v0  ;;  %p928_p0 = scmp.ne.s32.totalorder %s644_s30, %s927_s12 }
  0x22   : > { %816 = vmatmul.mubr.msk.bf16.vlgmr.msra.gmra.mxu0 %vm339_vm1, %v322_v5 }
  0x23   : > { %824 = vmatmul.mubr.msk.bf16.vlgmr.msra.gmra.mxu1 %vm339_vm1, %v403_v6  ;;  %829 = vmatprep.mubr.msk.bf16.mxu0 %vm1022_vm0, %v1021_v0  ;;  %p929_p1 = pnand %p928_p0, %p1103_p3 }
  0x24   : > { %835 = vmatprep.mubr.msk.bf16.mxu1 %vm1022_vm0, %v1021_v0 }
  0x25   : > { %p930_p2 = pneg %p929_p1 }
  0xe2   : > { %v377_v7 = vpop.f32.mrf.mxu0 }
  0xe3   : > { %v383_v8 = vpack.c.bf16 %v377_v7, %v377_v7  ;;  %v458_v9 = vpop.f32.mrf.mxu1 }
  0xe4   : > { %v817_v10 = vpop.f32.mrf.mxu0  ;;  %v464_v11 = vpack.c.bf16 %v458_v9, %v458_v9 }
  0xe5   : > { %389 = vst.msk [vmem:[#allocation6] sm:$0xf] %vm388_vm3, %v383_v8  ;;  %393 = vrot.lane.b32.xlu1 %v383_v8, %s1023_s9  ;;  %v825_v12 = vpop.f32.mrf.mxu1  ;;  %s933_s9 = scalar_lea.vmem %s932_s19, 128 }
  0xe6   : > { %466 = vst.msk [vmem:[#allocation2] sm:$0xf] %vm388_vm3, %v464_v11  ;;  %v380_v13 = vpop.f32.mrf.mxu0  ;;  %p935_p5 = scmp.lt.s32.totalorder %s933_s9, %s927_s12 }
  0xe7   : > { %v461_v14 = vpop.f32.mrf.mxu1 }
  0xe8   : > { %v818_v15 = vpop.f32.mrf.mxu0  ;;  %p936_p6 = por %p935_p5, %p934_p4 }
  0xe9   : > { %v826_v16 = vpop.f32.mrf.mxu1 }
  0xea   : > { %p937_p7 = pnand %p936_p6, %p930_p2 }
  0xec   : > { %v476_v17 = vld [vmem:[#allocation6] sm:$0xf] }
  0xed   : > { %v486_v18 = vsel %vm470_vm2, %v476_v17, 0  ;;  %v480_v19 = vld [vmem:[#allocation2] sm:$0xf] }
  0xee   : > { %828 = vmatpush3.bf16.xpose.msra.mxu0 %v486_v18 }
  0xf5   : > { %830 = vmatmul.mubr.msk.bf16.vlgmr.msra.gmra.mxu0 %vm470_vm2, %v480_v19 }
 0x157   : > { %v394_v21 = vpop.permute.xlu1 %393 }
 0x158   : > { %398 = vst.msk [vmem:[#allocation7] sm:$0xf] %vm388_vm3, %v394_v21 }
 0x15f   : > { %v479_v22 = vld [vmem:[#allocation7] sm:$0xf] }
 0x160   : > { %v566_v23 = vsel %vm564_vm5, %v479_v22, 0 }
 0x161   : > { %834 = vmatpush3.bf16.msra.mxu1 %v566_v23 }
 0x1b5   : > { %v522_v24 = vpop.f32.mrf.mxu0 }
 0x1b6   : > { %v530_v25 = vsel %vm529_vm6, %v522_v24, -inf }
 0x1b7   : > { %531 = vmax.xlane.f32.xlu0 %v530_v25  ;;  %v831_v26 = vpop.f32.mrf.mxu0 }
 0x1b9   : > { %v525_v27 = vpop.f32.mrf.mxu0 }
 0x1bb   : > { %v832_v28 = vpop.f32.mrf.mxu0 }
 0x240   : > { %v532_v31 = vpop.xlane.xlu0 %531 }
 0x241   : > { %v533_v32 = vmax.f32 %v528_v30, %v532_v31 }
 0x243   : > { %v534_v33 = vsub.f32 %v528_v30, %v533_v32  ;;  %610 = vst.msk [vmem:[#allocation3] sm:$0xff] %vm467_vm4, %v533_v32  ;;  %539 = vperm.xlu0 %915, %v533_v32  }
 0x245   : > { %v535_v38 = vmul.f32 1.442695, %v534_v33 }
 0x2be   : > { %v540_v34 = vpop.permute.xlu0 %539 }
 0x2bf   : > { %v542_v35 = vsub.f32 %v522_v24, %v540_v34 }
 0x2c1   : > { %v543_v36 = vmul.f32 1.442695, %v542_v35 }
 0x2c3   : > { %921 = vpow2.f32 %v543_v36 }
 0x2c4   : > { %923 = vpow2.f32 %v535_v38 }
 0x2d0   : > { %v922_v37 = vpop.eup %921 }
 0x2d1   : > { %v547_v39 = vsel %vm529_vm6, %v922_v37, 0.0  ;;  %v560_v40 = vpack.c.bf16 %v922_v37, %v922_v37  ;;  %v924_v41 = vpop.eup %923 }
 0x2d2   : > { %548 = vadd.xlane.f32.xlu1 %v547_v39  ;;  %v546_v43 = vmul.f32 %v924_v41, %v545_v42 }
 0x2d3   : > { %836 = vmatmul.mubr.msk.bf16.vlgmr.msra.gmra.mxu1 %vm529_vm6, %v560_v40 }
 0x2e3   : > { %556 = vperm.xlu1 %916, %v924_v41  }
 0x35b   : > { %v549_v44 = vpop.xlane.xlu1 %548 }
 0x35c   : > { %v550_v45 = vadd.f32 %v549_v44, %v546_v43 }
 0x35e   : > { %552 = vst.msk [vmem:[#allocation4] sm:$0xff] %vm467_vm4, %v550_v45 }
 0x35f   : > { %v557_v49 = vpop.permute.xlu1 %556 }
 0x360   : > { %v559_v50 = vmul.f32 %v557_v49, %v553_v48 }
 0x365   : > { %v615_v46 = vld [vmem:[#allocation4] sm:$0xff] }
 0x366   : > { %925 = vrcp.f32 %v615_v46 }
 0x373   : > { %v926_v47 = vpop.eup %925 }
 0x374   : > { %619 = vperm.xlu0 %915, %v926_v47  }
 0x393   : > { %v602_v51 = vpop.f32.mrf.mxu1 }
 0x394   : > { %v608_v52 = vadd.f32 %v602_v51, %v559_v50 }
 0x395   : > { %v837_v53 = vpop.f32.mrf.mxu1 }
 0x396   : > { %609 = vst.msk [vmem:[#allocation5] sm:$0xff] %vm470_vm2, %v608_v52 }
 0x397   : > { %v605_v54 = vpop.f32.mrf.mxu1 }
 0x399   : > { %v838_v55 = vpop.f32.mrf.mxu1 }
 0x39d   : > { %v614_v57 = vld [vmem:[#allocation5] sm:$0xff] }
 0x3ef   : > { %v620_v56 = vpop.permute.xlu0 %619 }
 0x3f0   : > { %v622_v58 = vmul.f32 %v620_v56, %v614_v57 }
 0x3f2   : > { %v623_v59 = vpack.c.bf16 %v622_v58, %v622_v58 }
 0x3f4   : > { %625 = vst.msk [vmem:[%s287_s27] sm:$0xf] %vm388_vm3, %v623_v59 }
 0x3f5   : > { %940 = shalt.err (!%p937_p7)
}
 0x3f6   : > { %s941_s13 = scalar_lea.hbm %s641_s8, 64  ;;  %s945_s23 = scalar_lea.hbm %s1208_s4, 256 }
 0x3f7   : > { %p942_p9 = scmp.ne.s32.totalorder %s641_s8, %s941_s13  ;;  %p946_p12 = scmp.lt.s32.totalorder %s641_s8, %s1208_s4 }
 0x3f8   : > { %p947_p13 = scmp.lt.s32.totalorder %s945_s23, %s941_s13 }
 0x3f9   : > { %p943_p10 = pnand %p942_p9, %p1103_p3 }
 0x3fa   : > { %p948_p0 = por %p947_p13, %p946_p12 }
 0x3fb   : > { %p944_p11 = pneg %p943_p10 }
 0x3fd   : > { %p949_p1 = pnand %p948_p0, %p944_p11 }
 0x3ff   : > { %952 = shalt.err (!%p949_p1)
}
 0x400   : > { %839 = dma.vmem_to_hbm [thread:$0]  (%p1103_p3), %s644_s30, 64, %s641_s8, %s627_s11  }
 0x401 PF: > { %p845_p2 = scmp.ge.s32.totalorder %s1019_s22, 2  ;;  %s655_s5 = sand.u32 1, %s991_s15  }
 0x402   : > { %s656_s6 = scalar_lea.sflag [#allocation9], %s655_s5 }
 0x403   : > { %p842_p4 = pnand %p845_p2, %p1112_p8 }
 0x405   : > { %p843_p5 = pneg %p842_p4 }
 0x407   : > { %986 = dma.done.wait (%p843_p5), %s656_s6, 64  }
 0x408   : > { %988 = vsyncadd (%p843_p5), %s656_s6, 4294967232  ;;  %s17_s22 = sadd.s32 1, %s1019_s22   ;;  %s1211_s15 = smov %s995_s16 }
 0x409   : > { %p14_p6 = scmp.ge.s32.totalorder %s17_s22, 6   ;;  %s1212_s16 = smov %s999_s17 }
 0x40a   : > { %s1213_s17 = smov %s1121_s7  ;;  %s1214_s18 = smov %s1011_s20 }
 0x40b   : > { %s1215_s19 = smov %s1015_s21  ;;  %s1216_s20 = smov %s1219_s25 }
 0x40c   : > { %s1217_s21 = smov %s1223_s26  ;;  %16 = sbr.rel (!%p14_p6) target bundleno = 5 (0x5), region = 96 }
 0x411   :  { %661 = vsyncpa [#allocation9], 1 }
 0x412   :  { %663 = vsyncpa [#allocation9 + $0x1], 1 }

</bundles_post_ra>
